<compile_context>
chip_gen: v7x
topology: tpu7x:2x2x1
jax: 0.10.0
libtpu: 0.0.40
codegen_flags: <defaults>
</compile_context>

<pallas_src>
import jax
import jax.numpy as jnp
import numpy as np
from jax.experimental import pallas as pl
from jax.experimental.pallas import tpu as pltpu

# ---------------- configuration (small, consistent with the module) ---------
B = 2           # batch
N = 8           # sequence length
DIM = 32        # model dim
HEADS = 4       # heads
DH = 16         # dim_head
INNER = HEADS * DH          # 64
BN = B * N                  # 16 flattened rows
SCALE = DH ** (-0.5)        # 0.25


# ---------------------------- Pallas kernel ---------------------------------
def attention_kernel(x_ref, wqkv_ref, wo_ref, bo_ref, o_ref):
    # x_ref   : (N, DIM)          one batch element's rows
    # wqkv_ref: (DIM, 3*INNER)    packed qkv projection (lane-dense, 192 lanes)
    # wo_ref  : (INNER, DIM)      output projection
    # bo_ref  : (1, DIM)
    # o_ref   : (N, DIM)
    x = x_ref[...].astype(jnp.float32)                                # (N, DIM)

    # Fused qkv projection: one lane-dense MXU matmul (contraction = DIM).
    qkv = jnp.dot(x, wqkv_ref[...],
                  preferred_element_type=jnp.float32)                 # (N, 3*INNER)

    # Scale q once (single VPU mul), then carve heads out of the lane axis.
    q = qkv[:, 0 * INNER:1 * INNER] * SCALE                           # (N, INNER)
    k = qkv[:, 1 * INNER:2 * INNER]
    v = qkv[:, 2 * INNER:3 * INNER]

    def to_heads(t):  # (N, H*DH) -> (H, N, DH); head-carving rides XLU slots
        return t.reshape(N, HEADS, DH).transpose(1, 0, 2)

    qh, kh, vh = to_heads(q), to_heads(k), to_heads(v)                # (H, N, DH)

    # Scores for all heads at once (batched over the leading head axis).
    s = jnp.einsum('hid,hjd->hij', qh, kh,
                   preferred_element_type=jnp.float32)                # (H, N, N)

    # Numerically-stable softmax over keys, all in f32, exact reciprocal.
    m = jnp.max(s, axis=-1, keepdims=True)
    p = jnp.exp(s - m)
    denom = jnp.sum(p, axis=-1, keepdims=True)
    attn = p / denom                                                  # (H, N, N)

    # Attention-weighted values, batched over heads.
    o = jnp.einsum('hij,hjd->hid', attn, vh,
                   preferred_element_type=jnp.float32)                # (H, N, DH)

    # Pack heads back into the lane axis and run ONE output projection
    # (contraction = INNER = 64), then add bias.  Dropout(0.0) == identity.
    o_flat = o.transpose(1, 0, 2).reshape(N, INNER)                   # (N, INNER)
    y = jnp.dot(o_flat, wo_ref[...],
                preferred_element_type=jnp.float32) + bo_ref[...]     # (N, DIM)
    o_ref[...] = y.astype(o_ref.dtype)


def attention_forward(x, w_qkv, w_out, b_out):
    """x: (B, N, DIM) float32 -> (B, N, DIM) float32 (matches the module)."""
    x_flat = x.reshape(BN, DIM)
    bo = b_out.reshape(1, DIM)

    y_flat = pl.pallas_call(
        attention_kernel,
        out_shape=jax.ShapeDtypeStruct((BN, DIM), jnp.float32),
        grid_spec=pltpu.PrefetchScalarGridSpec(
            num_scalar_prefetch=0,
            grid=(B,),   # one grid step per batch element; "parallel" so v7x's
                         # two TensorCores can split the batch.
            in_specs=[
                pl.BlockSpec((N, DIM), lambda b: (b, 0)),          # this batch's rows
                pl.BlockSpec((DIM, 3 * INNER), lambda b: (0, 0)),  # packed qkv weights
                pl.BlockSpec((INNER, DIM), lambda b: (0, 0)),      # output projection
                pl.BlockSpec((1, DIM), lambda b: (0, 0)),          # output bias
            ],
            out_specs=pl.BlockSpec((N, DIM), lambda b: (b, 0)),
        ),
        compiler_params=pltpu.CompilerParams(
            dimension_semantics=("parallel",)),
    )(x_flat, w_qkv, w_out, bo)
    return y_flat.reshape(B, N, DIM)


# ------------------------- pure-JAX reference -------------------------------
def attention_reference(x, w_qkv, w_out, b_out):
    hi = jax.lax.Precision.HIGHEST
    qkv = jnp.dot(x, w_qkv, precision=hi)                            # (B, N, 3*INNER)
    q, k, v = jnp.split(qkv, 3, axis=-1)

    def to_heads(t):  # (B, N, H*D) -> (B, H, N, D)
        return t.reshape(B, N, HEADS, DH).transpose(0, 2, 1, 3)

    q, k, v = map(to_heads, (q, k, v))
    dots = jnp.einsum('bhid,bhjd->bhij', q, k, precision=hi) * SCALE
    attn = jax.nn.softmax(dots, axis=-1)
    out = jnp.einsum('bhij,bhjd->bhid', attn, v, precision=hi)
    out = out.transpose(0, 2, 1, 3).reshape(B, N, INNER)
    return jnp.dot(out, w_out, precision=hi) + b_out


# ------------------------------------ main -----------------------------------
if __name__ == "__main__":
    key = jax.random.PRNGKey(0)
    kx, kq, kw, kb = jax.random.split(key, 4)

    x = jax.random.normal(kx, (B, N, DIM), dtype=jnp.float32)
    # deterministic parameter init (synthetic, not a checkpoint load)
    w_qkv = jax.random.normal(kq, (DIM, 3 * INNER), dtype=jnp.float32) * 0.05
    w_out = jax.random.normal(kw, (INNER, DIM), dtype=jnp.float32) * 0.05
    b_out = jax.random.normal(kb, (DIM,), dtype=jnp.float32) * 0.05

    y = attention_forward(x, w_qkv, w_out, b_out)
    jax.block_until_ready(y)

    y_ref = attention_reference(x, w_qkv, w_out, b_out)
    np.testing.assert_allclose(np.asarray(y), np.asarray(y_ref),
                               rtol=1e-4, atol=1e-5)

    print("KERNEL_OK")
</pallas_src>

<mosaic_0001>
module attributes {stable_mosaic.version = 11 : i64} {
  func.func @attention_kernel(%arg0: i32, %arg1: memref<8x32xf32, #tpu.memory_space<vmem>>, %arg2: memref<32x192xf32, #tpu.memory_space<vmem>>, %arg3: memref<64x32xf32, #tpu.memory_space<vmem>>, %arg4: memref<1x32xf32, #tpu.memory_space<vmem>>, %arg5: memref<8x32xf32, #tpu.memory_space<vmem>>) attributes {dimension_semantics = [#tpu.dimension_semantics<parallel>], iteration_bounds = array<i64: 2>, scalar_prefetch = 0 : i64, scratch_operands = 0 : i64, tpu.core_type = #tpu.core_type<tc>, window_params = [{transform_indices = @transform_0, window_bounds = array<i64: 8, 32>}, {pipeline_mode = #tpu.pipeline_mode<synchronous>, transform_indices = @transform_1, window_bounds = array<i64: 32, 192>}, {pipeline_mode = #tpu.pipeline_mode<synchronous>, transform_indices = @transform_2, window_bounds = array<i64: 64, 32>}, {pipeline_mode = #tpu.pipeline_mode<synchronous>, transform_indices = @transform_3, window_bounds = array<i64: 1, 32>}, {transform_indices = @transform_4, window_bounds = array<i64: 8, 32>}]} {
    %c0 = arith.constant 0 : index
    %c0_0 = arith.constant 0 : index
    %0 = vector.load %arg1[%c0, %c0_0] : memref<8x32xf32, #tpu.memory_space<vmem>>, vector<8x32xf32>
    %c0_1 = arith.constant 0 : index
    %c0_2 = arith.constant 0 : index
    %1 = vector.load %arg2[%c0_1, %c0_2] : memref<32x192xf32, #tpu.memory_space<vmem>>, vector<32x192xf32>
    %cst = arith.constant dense<0.000000e+00> : vector<8x192xf32>
    %2 = tpu.matmul %0, %1, %cst {dimension_numbers = #tpu.dot_dimension_numbers<[1], [0], [0], [1], [0, 0, 1, 1], [], []>} : vector<8x32xf32>, vector<32x192xf32>, vector<8x192xf32> -> vector<8x192xf32>
    %3 = vector.extract_strided_slice %2 {offsets = [0, 0], sizes = [8, 64], strides = [1, 1]} : vector<8x192xf32> to vector<8x64xf32>
    %cst_3 = arith.constant 2.500000e-01 : f32
    %4 = vector.broadcast %cst_3 : f32 to vector<8x64xf32>
    %5 = arith.mulf %3, %4 : vector<8x64xf32>
    %6 = vector.extract_strided_slice %2 {offsets = [0, 64], sizes = [8, 64], strides = [1, 1]} : vector<8x192xf32> to vector<8x64xf32>
    %7 = vector.extract_strided_slice %2 {offsets = [0, 128], sizes = [8, 64], strides = [1, 1]} : vector<8x192xf32> to vector<8x64xf32>
    %8 = vector.shape_cast %5 : vector<8x64xf32> to vector<8x4x16xf32>
    %9 = tpu.transpose %8, [1, 0, 2] : vector<8x4x16xf32> -> vector<4x8x16xf32>
    %10 = vector.shape_cast %6 : vector<8x64xf32> to vector<8x4x16xf32>
    %11 = tpu.transpose %10, [1, 0, 2] : vector<8x4x16xf32> -> vector<4x8x16xf32>
    %12 = vector.shape_cast %7 : vector<8x64xf32> to vector<8x4x16xf32>
    %13 = tpu.transpose %12, [1, 0, 2] : vector<8x4x16xf32> -> vector<4x8x16xf32>
    "tpu.trace_start"() <{level = 10 : i32, message = "hid,hjd->hij"}> : () -> ()
    %cst_4 = arith.constant dense<0.000000e+00> : vector<4x8x8xf32>
    %14 = tpu.matmul %9, %11, %cst_4 {dimension_numbers = #tpu.dot_dimension_numbers<[2], [2], [1], [1], [0, 0, 0, 1, 1, 1], [0], [0]>} : vector<4x8x16xf32>, vector<4x8x16xf32>, vector<4x8x8xf32> -> vector<4x8x8xf32>
    "tpu.trace_stop"() : () -> ()
    %cst_5 = arith.constant dense<0xFF800000> : vector<4x8xf32>
    %15 = vector.multi_reduction <maximumf>, %14, %cst_5 [2] : vector<4x8x8xf32> to vector<4x8xf32>
    %16 = vector.shape_cast %15 : vector<4x8xf32> to vector<4x8x1xf32>
    %17 = vector.broadcast %16 : vector<4x8x1xf32> to vector<4x8x8xf32>
    %18 = arith.subf %14, %17 : vector<4x8x8xf32>
    %19 = math.exp %18 : vector<4x8x8xf32>
    %cst_6 = arith.constant dense<0.000000e+00> : vector<4x8xf32>
    %20 = vector.multi_reduction <add>, %19, %cst_6 [2] : vector<4x8x8xf32> to vector<4x8xf32>
    %21 = vector.shape_cast %20 : vector<4x8xf32> to vector<4x8x1xf32>
    %22 = vector.broadcast %21 : vector<4x8x1xf32> to vector<4x8x8xf32>
    %23 = arith.divf %19, %22 : vector<4x8x8xf32>
    "tpu.trace_start"() <{level = 10 : i32, message = "hij,hjd->hid"}> : () -> ()
    %cst_7 = arith.constant dense<0.000000e+00> : vector<4x8x16xf32>
    %24 = tpu.matmul %23, %13, %cst_7 {dimension_numbers = #tpu.dot_dimension_numbers<[2], [1], [1], [2], [0, 0, 0, 1, 1, 2], [0], [0]>} : vector<4x8x8xf32>, vector<4x8x16xf32>, vector<4x8x16xf32> -> vector<4x8x16xf32>
    "tpu.trace_stop"() : () -> ()
    %25 = tpu.transpose %24, [1, 0, 2] : vector<4x8x16xf32> -> vector<8x4x16xf32>
    %26 = vector.shape_cast %25 : vector<8x4x16xf32> to vector<8x64xf32>
    %c0_8 = arith.constant 0 : index
    %c0_9 = arith.constant 0 : index
    %27 = vector.load %arg3[%c0_8, %c0_9] : memref<64x32xf32, #tpu.memory_space<vmem>>, vector<64x32xf32>
    %cst_10 = arith.constant dense<0.000000e+00> : vector<8x32xf32>
    %28 = tpu.matmul %26, %27, %cst_10 {dimension_numbers = #tpu.dot_dimension_numbers<[1], [0], [0], [1], [0, 0, 1, 1], [], []>} : vector<8x64xf32>, vector<64x32xf32>, vector<8x32xf32> -> vector<8x32xf32>
    %c0_11 = arith.constant 0 : index
    %c0_12 = arith.constant 0 : index
    %29 = vector.load %arg4[%c0_11, %c0_12] : memref<1x32xf32, #tpu.memory_space<vmem>>, vector<1x32xf32>
    %30 = vector.broadcast %29 : vector<1x32xf32> to vector<8x32xf32>
    %31 = arith.addf %28, %30 : vector<8x32xf32>
    %c0_13 = arith.constant 0 : index
    %c0_14 = arith.constant 0 : index
    %32 = vector.load %arg5[%c0_13, %c0_14] : memref<8x32xf32, #tpu.memory_space<vmem>>, vector<8x32xf32>
    tpu.vector_store %arg5[%c0_13, %c0_14], %31 {strides = array<i32>} : memref<8x32xf32, #tpu.memory_space<vmem>>, vector<8x32xf32>,
    return
  }
  func.func @transform_0(%arg0: i32) -> (i32, i32) {
    %c0_i32 = arith.constant 0 : i32
    %c0_i32_0 = arith.constant 0 : i32
    return %arg0, %c0_i32 : i32, i32
  }
  func.func @transform_1(%arg0: i32) -> (i32, i32) {
    %c0_i32 = arith.constant 0 : i32
    %c0_i32_0 = arith.constant 0 : i32
    %c0_i32_1 = arith.constant 0 : i32
    return %c0_i32, %c0_i32_0 : i32, i32
  }
  func.func @transform_2(%arg0: i32) -> (i32, i32) {
    %c0_i32 = arith.constant 0 : i32
    %c0_i32_0 = arith.constant 0 : i32
    %c0_i32_1 = arith.constant 0 : i32
    return %c0_i32, %c0_i32_0 : i32, i32
  }
  func.func @transform_3(%arg0: i32) -> (i32, i32) {
    %c0_i32 = arith.constant 0 : i32
    %c0_i32_0 = arith.constant 0 : i32
    %c0_i32_1 = arith.constant 0 : i32
    return %c0_i32, %c0_i32_0 : i32, i32
  }
  func.func @transform_4(%arg0: i32) -> (i32, i32) {
    %c0_i32 = arith.constant 0 : i32
    %c0_i32_0 = arith.constant 0 : i32
    return %arg0, %c0_i32 : i32, i32
  }
}

</mosaic_0001>

<bundles_post_ra>
// kernel: tpu_custom_call.1
= control target key start
LH: loop header
LB: loop body
LE: loop exit
PB: predicated region body
PF: predicated region fallthrough
CT: control target
= control target key end

     0   :  { %9 = vsyncpa [#allocation3], 0  ;;  %s2286_s0 = inlined_call_operand.vmem [shape: f32[16,32], index: 0, kind: input, shape index: {}]   ;;  %s2287_s1 = inlined_call_operand.vmem [shape: f32[32,192], index: 1, kind: input, shape index: {}]   ;;  %s2288_s2 = inlined_call_operand.vmem [shape: f32[64,32], index: 2, kind: input, shape index: {}]   ;;  %s2289_s3 = inlined_call_operand.vmem [shape: f32[1,32], index: 3, kind: input, shape index: {}]   ;;  %s2290_s4 = inlined_call_operand.hbm [shape: f32[16,32], index: 4, kind: output, shape index: {}]  }
   0x1   :  { %11 = vsyncpa [#allocation3 + $0x1], 0  ;;  %s1988_s15 = smov 0   ;;  %s1990_s16 = smov 0  }
   0x2   :  { %s1992_s17 = smov 0   ;;  %s1994_s18 = smov 0  }
   0x3 LB: > { %s2009_s19 = sadd.s32 4294967295, %s1948_s18   ;;  %s1682_s20 = sadd.s32 4294967294, %s1948_s18   ;;  %s1948_s18 = sphi %s1994_s18, %s2296_s18   ;;  %s1944_s17 = sphi %s1992_s17, %s2295_s17   ;;  %s1940_s16 = sphi %s1990_s16, %s2294_s16   ;;  %s1936_s15 = sphi %s1988_s15, %s2293_s15  }
   0x4   : > { %s2013_s21 = sadd.s32 1, %s1948_s18   ;;  %s113_s22 = sadd.s32 1, %s1944_s17 }
   0x5   : > { %s110_s23 = ssub.s32 %s1948_s18, %s2013_s21  ;;  %p123_p0 = scmp.ne.s32.totalorder %s1944_s17, %s1940_s16 }
   0x6   : > { %p111_p1 = scmp.eq.s32.totalorder %s110_s23, 0  ;;  %p124_p2 = scmp.eq.s32.totalorder %s2009_s19, 1 }
   0x7   : > { %p129_p3 = scmp.ne.s32.totalorder %s1940_s16, %s1936_s15  ;;  %p130_p4 = scmp.eq.s32.totalorder %s1682_s20, 1 }
   0x8   : > { %s2024_s24 = scalar_select %p111_p1, %s1944_s17, %s113_s22  }
   0x9   : > { %p2026_p5 = por %p124_p2, %p123_p0  ;;  %p2030_p6 = por %p130_p4, %p129_p3 }
   0xa   : > { %p1685_p7 = scmp.ge.s32.totalorder %s1948_s18, 1  ;;  %p164_p8 = scmp.lt.s32.totalorder %s1948_s18, 3 }
   0xc   : > { %p165_p9 = pnand %p1685_p7, %p164_p8 }
   0xd   : > { %v195_v0 = vld [vmem:[%s2287_s1 + $0x8] sm:$0xff] (!%p165_p9)  ;;  %v197_v1 = vld [vmem:[%s2287_s1 + $0x18] sm:$0xff] (!%p165_p9)  ;;  %v194_v2 = vld [vmem:[%s2287_s1] sm:$0xff] (!%p165_p9)  ;;  %p189_p10 = scmp.lt.s32.totalorder (!%p165_p9), %s2009_s19, 1  ;;  %v1950_v7 = vmov (!%p165_p9), 0.0   ;;  %vm202_vm0 = vcmask (!%p165_p9), 261120   ;;  %v293_v23 = vlaneseq (!%p165_p9) }
   0xe   : > { %168 = sbr.rel (%p165_p9) target bundleno = 1622 (0x656), region = 36  ;;  %v1799_v3 = vpack.c.bf16 (!%p165_p9), %v197_v1, %v195_v0  ;;  %v196_v4 = vld [vmem:[%s2287_s1 + $0x10] sm:$0xff] (!%p165_p9)  ;;  %v199_v5 = vld [vmem:[%s2287_s1 + $0x28] sm:$0xff] (!%p165_p9)  ;;  %v201_v6 = vld [vmem:[%s2287_s1 + $0x38] sm:$0xff] (!%p165_p9)  ;;  %270 = vmatprep.mubr.f32.mxu1 (!%p165_p9), %v1950_v7  ;;  %1750 = vmatprep.subr.mxu0 (!%p165_p9), %v1950_v7  ;;  %s1951_s5 = smov (!%p165_p9), 80   ;;  %vm1955_vm1 = vmmov (!%p165_p9), 0  }
   0xf   : > { %v1801_v8 = vpack.c.bf16 (!%p165_p9), %v196_v4, %v194_v2  ;;  %v1803_v9 = vpack.c.bf16 (!%p165_p9), %v201_v6, %v199_v5  ;;  %v198_v10 = vld [vmem:[%s2287_s1 + $0x20] sm:$0xff] (!%p165_p9)  ;;  %v200_v11 = vld [vmem:[%s2287_s1 + $0x30] sm:$0xff] (!%p165_p9)  ;;  %s1952_s6 = smov (!%p165_p9), 112   ;;  %s1953_s7 = smov (!%p165_p9), 64   ;;  %1752 = vmatprep.mubr.msk.f32.mxu0 (!%p165_p9), %vm1955_vm1, %v1950_v7  ;;  %v1956_v21 = vmov (!%p165_p9), 1983009808  }
  0x10   : > { %1800 = vmatprep.subr.bf16.mxu1 (!%p165_p9), %v1799_v3  ;;  %v1805_v12 = vpack.c.bf16 (!%p165_p9), %v200_v11, %v198_v10  ;;  %s1954_s8 = smov (!%p165_p9), 96   ;;  %v291_v22 = vunpack.c.l.s4 (!%p165_p9), %v1956_v21  ;;  %v1957_v24 = vmov (!%p165_p9), 1934713408   ;;  %v294_v27 = vshrl.u32 (!%p165_p9), %v293_v23, 7  ;;  %s1960_s9 = smov (!%p165_p9), 16  }
  0x11   : > { %1802 = vmatpush1.bf16.msra.mxu1 (!%p165_p9), %v1801_v8  ;;  %v323_v25 = vunpack.c.l.s4 (!%p165_p9), %v1957_v24  ;;  %vm725_vm2 = vcmask (!%p165_p9), 130048   ;;  %vm1030_vm3 = vcmask (!%p165_p9), 64512   ;;  %s1961_s10 = smov (!%p165_p9), 48   ;;  %vm1517_vm4 = vcmask (!%p165_p9), 392192   ;;  %s186_s11 = sand.u32 (!%p165_p9), 1, %s1940_s16  }
  0x12   : > { %1804 = vmatprep.subr.bf16.mxu1 (!%p165_p9), %v1803_v9  ;;  %v292_v26 = vunpack.c.0.s8 (!%p165_p9), %v291_v22  ;;  %vm1534_vm5 = vcmask (!%p165_p9), 523264   ;;  %s1686_s12 = sshll.u32 (!%p165_p9), %s186_s11, 3  ;;  %s1712_s20 = sshll.u32 (!%p165_p9), %s2009_s19, 7 }
  0x13   : > { %v324_v30 = vunpack.c.0.s8 (!%p165_p9), %v323_v25  ;;  %s188_s22 = scalar_lea.vmem (!%p165_p9), [#allocation2], %s1686_s12  ;;  %s2243_s29 = scalar_lea.hbm (!%p165_p9), %s2290_s4, %s1712_s20 }
  0x14   : > { %v2081_v31 = vsub.s32 (!%p165_p9), %v292_v26, %v294_v27 }
  0x15   : > { %s190_s23 = scalar_select %p189_p10, %s2009_s19, 1  ;;  %1806 = vmatpush1.bf16.msra.mxu1 %v1805_v12  ;;  %v2083_v38 = vsub.s32 %v324_v30, %v294_v27 }
  0x16   : > { %1740 = vmatprep.subr.mxu1 %v1950_v7  ;;  %s1962_s19 = smov [#allocation2]  }
  0x17   : > { %s1687_s27 = sshll.u32 %s190_s23, 3  ;;  %s1623_s23 = sshll.u32 %s188_s22, 4  ;;  %s2245_s23 = int_to_ptr.vmem [resolvable:$true] %s1623_s23 }
  0x18   : > { %s192_s30 = scalar_lea.vmem %s2286_s0, %s1687_s27 }
  0x19   : > { %v193_v13 = vld [vmem:[%s192_s30] sm:$0xff]  ;;  %s1610_s30 = scalar_lea.sflag [#allocation3], %s186_s11 }
  0x1a   : > { %1688 = vmatmul.mubr.msk.f32.vlgmr.msra.gmra.mrb[0].mxu1 %vm202_vm0, %v193_v13 }
  0x1b   : > { %1742 = vmatprep.mubr.msk.f32.mxu1 %vm1955_vm1, %v1950_v7 }
  0xed   : > { %v272_v14 = vpop.f32.mrb[0].mxu1 }
  0xee   : > { %429 = vrot.lane.b32.xlu1 %v272_v14, %s1951_s5  ;;  %425 = vrot.lane.b32.xlu0 %v272_v14, %s1952_s6  ;;  %v2071_v15 = vpop.f32.mrb[1].mxu1  ;;  %v277_v16 = vmul.f32 0.25, %v272_v14 }
  0xf2   : > { %431 = vrot.lane.b32.xlu1 %v272_v14, %s1953_s7  ;;  %427 = vrot.lane.b32.xlu0 %v272_v14, %s1954_s8 }
  0xf6   : > { %279 = vrot.lane.b32.xlu1 %v277_v16, %s1952_s6 }
 0x160   : > { %v426_v17 = vpop.permute.xlu0 %425  ;;  %v430_v18 = vpop.permute.xlu1 %429 }
 0x161   : > { %433 = vrot.lane.b32.xlu0 %v426_v17, %s1953_s7 }
 0x164   : > { %v428_v19 = vpop.permute.xlu0 %427  ;;  %v432_v20 = vpop.permute.xlu1 %431 }
 0x165   : > { %437 = vrot.lane.b32.xlu0 %v430_v18, %s1953_s7  ;;  %435 = vrot.lane.b32.xlu1 %v428_v19, %s1953_s7 }
 0x168   : > { %v280_v28 = vpop.permute.xlu1 %279 }
 0x169   : > { %282 = vrot.lane.b32.xlu0 %v277_v16, %s1954_s8  ;;  %285 = vrot.lane.b32.xlu1 %v277_v16, %s1951_s5 }
 0x1d3   : > { %v434_v29 = vpop.permute.xlu0 %433 }
 0x1d7   : > { %v438_v32 = vpop.permute.xlu0 %437  ;;  %v436_v33 = vpop.permute.xlu1 %435 }
 0x1d8   : > { %v459_v34 = vcombine.low %v434_v29, %v438_v32  ;;  %v460_v35 = vcombine.high %v434_v29, %v438_v32  ;;  %v443_v36 = vcombine.low %v432_v20, %v436_v33  ;;  %v444_v37 = vcombine.high %v432_v20, %v436_v33 }
 0x1da   : > { %v467_v39 = vrot.slane %v459_v34, %v2081_v31  ;;  %v474_v40 = vrot.slane %v460_v35, %v2081_v31  ;;  %v451_v41 = vrot.slane %v443_v36, %v2081_v31  ;;  %v458_v42 = vrot.slane %v444_v37, %v2081_v31 }
 0x1db   : > { %v283_v43 = vpop.permute.xlu0 %282  ;;  %v286_v44 = vpop.permute.xlu1 %285 }
 0x1dc   : > { %v475_v45 = vcombine.low %v451_v41, %v467_v39  ;;  %v476_v46 = vcombine.high %v451_v41, %v467_v39  ;;  %v491_v47 = vcombine.low %v458_v42, %v474_v40  ;;  %v492_v48 = vcombine.high %v458_v42, %v474_v40 }
 0x1dd   : > { %v288_v49 = vcombine.low %v277_v16, %v283_v43  ;;  %v289_v50 = vcombine.high %v277_v16, %v283_v43  ;;  %v304_v51 = vcombine.low %v280_v28, %v286_v44  ;;  %v305_v52 = vcombine.high %v280_v28, %v286_v44 }
 0x1de   : > { %v483_v53 = vrot.slane %v475_v45, %v2083_v38  ;;  %v490_v54 = vrot.slane %v476_v46, %v2083_v38  ;;  %v499_v55 = vrot.slane %v491_v47, %v2083_v38  ;;  %v506_v56 = vrot.slane %v492_v48, %v2083_v38 }
 0x1df   : > { %v296_v57 = vrot.slane %v288_v49, %v2081_v31  ;;  %v303_v58 = vrot.slane %v289_v50, %v2081_v31  ;;  %v312_v59 = vrot.slane %v304_v51, %v2081_v31  ;;  %v319_v60 = vrot.slane %v305_v52, %v2081_v31 }
 0x1e0   : > { %v511_v61 = vcombine.low %v483_v53, %v490_v54  ;;  %v1691_v62 = vcombine.high %v483_v53, %v490_v54  ;;  %v527_v63 = vcombine.low %v499_v55, %v506_v56  ;;  %v1692_v0 = vcombine.high %v499_v55, %v506_v56 }
 0x1e1   : > { %v320_v1 = vcombine.low %v296_v57, %v312_v59  ;;  %v321_v2 = vcombine.high %v296_v57, %v312_v59  ;;  %v336_v3 = vcombine.low %v303_v58, %v319_v60  ;;  %v337_v4 = vcombine.high %v303_v58, %v319_v60 }
 0x1e2   : > { %v518_v5 = vrot.slane %v511_v61, %v2081_v31  ;;  %v526_v6 = vrot.slane %v1691_v62, %v2081_v31  ;;  %v534_v8 = vrot.slane %v527_v63, %v2081_v31  ;;  %v542_v9 = vrot.slane %v1692_v0, %v2081_v31 }
 0x1e3   : > { %v328_v10 = vrot.slane %v320_v1, %v2083_v38  ;;  %v335_v11 = vrot.slane %v321_v2, %v2083_v38  ;;  %v344_v12 = vrot.slane %v336_v3, %v2083_v38  ;;  %v351_v13 = vrot.slane %v337_v4, %v2083_v38 }
 0x1e4   : > { %v543_v14 = vcombine.low %v518_v5, %v526_v6  ;;  %v559_v16 = vcombine.low %v534_v8, %v542_v9  ;;  %v544_v17 = vcombine.high %v518_v5, %v526_v6  ;;  %v560_v18 = vcombine.high %v534_v8, %v542_v9 }
 0x1e5   : > { %v356_v19 = vcombine.low %v328_v10, %v335_v11  ;;  %v1689_v20 = vcombine.high %v328_v10, %v335_v11  ;;  %v372_v21 = vcombine.low %v344_v12, %v351_v13  ;;  %v1690_v22 = vcombine.high %v344_v12, %v351_v13 }
 0x1e6   : > { %v551_v23 = vrot.slane %v543_v14, %v2083_v38  ;;  %v567_v24 = vrot.slane %v559_v16, %v2083_v38  ;;  %v558_v25 = vrot.slane %v544_v17, %v2083_v38  ;;  %v574_v26 = vrot.slane %v560_v18, %v2083_v38 }
 0x1e7   : > { %v363_v27 = vrot.slane %v356_v19, %v2081_v31  ;;  %v371_v28 = vrot.slane %v1689_v20, %v2081_v31  ;;  %v379_v29 = vrot.slane %v372_v21, %v2081_v31  ;;  %v387_v30 = vrot.slane %v1690_v22, %v2081_v31 }
 0x1e8   : > { %v575_v32 = vcombine.low %v551_v23, %v567_v24  ;;  %v577_v33 = vcombine.low %v558_v25, %v574_v26  ;;  %v576_v45 = vcombine.high %v551_v23, %v567_v24  ;;  %v578_v47 = vcombine.high %v558_v25, %v574_v26 }
 0x1e9   : > { %v388_v34 = vcombine.low %v363_v27, %v371_v28  ;;  %v404_v35 = vcombine.low %v379_v29, %v387_v30  ;;  %v389_v36 = vcombine.high %v363_v27, %v371_v28  ;;  %v405_v37 = vcombine.high %v379_v29, %v387_v30 }
 0x1ea   : > { %1741 = vmatpush3.xpose.msk.msra.mxu1 %vm725_vm2, %v575_v32  ;;  %1751 = vmatpush3.xpose.msk.msra.mxu0 %vm725_vm2, %v577_v33 }
 0x1eb   : > { %1745 = vmatprep.subr.mxu1 %v1950_v7  ;;  %v396_v39 = vrot.slane %v388_v34, %v2083_v38  ;;  %v412_v40 = vrot.slane %v404_v35, %v2083_v38  ;;  %v403_v41 = vrot.slane %v389_v36, %v2083_v38  ;;  %v419_v42 = vrot.slane %v405_v37, %v2083_v38 }
 0x1ec   : > { %1760 = vmatprep.subr.mxu0 %v1950_v7 }
 0x1ed   : > { %v420_v43 = vcombine.low %v396_v39, %v412_v40  ;;  %v422_v44 = vcombine.low %v403_v41, %v419_v42  ;;  %v421_v46 = vcombine.high %v396_v39, %v412_v40  ;;  %v423_v48 = vcombine.high %v403_v41, %v419_v42 }
 0x1ef   : > { %1743 = vmatmul.mubr.msk.f32.vlgmr.msra.gmra.mrb[2].mxu1 %vm725_vm2, %v420_v43  ;;  %1753 = vmatmul.mubr.msk.f32.vlgmr.msra.gmra.mrb[0].mxu0 %vm725_vm2, %v422_v44 }
 0x1f0   : > { %1746 = vmatpush3.xpose.msk.msra.mxu1 %vm725_vm2, %v576_v45  ;;  %1747 = vmatprep.mubr.msk.f32.mxu1 %vm1955_vm1, %v1950_v7 }
 0x1f1   : > { %1755 = vmatprep.subr.mxu1 %v1950_v7  ;;  %1762 = vmatprep.mubr.msk.f32.mxu0 %vm1955_vm1, %v1950_v7 }
 0x1f3   : > { %1748 = vmatmul.mubr.msk.f32.vlgmr.msra.gmra.mrb[4].mxu1 %vm725_vm2, %v421_v46 }
 0x1f4   : > { %1756 = vmatpush3.xpose.msk.msra.mxu1 %vm725_vm2, %v578_v47  ;;  %1757 = vmatprep.mubr.msk.f32.mxu1 %vm1955_vm1, %v1950_v7 }
 0x1f5   : > { %1765 = vmatprep.subr.mxu1 %v1950_v7 }
 0x1f7   : > { %1758 = vmatmul.mubr.msk.f32.vlgmr.msra.gmra.mrb[6].mxu1 %vm725_vm2, %v423_v48 }
 0x1f8   : > { %1767 = vmatprep.mubr.msk.f32.mxu1 %vm1955_vm1, %v1950_v7 }
 0x2c2   : > { %v798_v49 = vpop.f32.mrb[2].mxu1  ;;  %v950_v50 = vpop.f32.mrb[0].mxu0 }
 0x2c3   : > { %v1744_v51 = vpop.f32.mrb[3].mxu1  ;;  %v1754_v52 = vpop.f32.mrb[1].mxu0  ;;  %v1031_v53 = vsel %vm1030_vm3, %v798_v49, -inf  ;;  %v1037_v56 = vsel %vm1030_vm3, %v950_v50, -inf }
 0x2c4   : > { %1032 = vmax.xlane.f32.xlu0 %v1031_v53 }
 0x2c6   : > { %v874_v54 = vpop.f32.mrb[4].mxu1 }
 0x2c7   : > { %v1749_v55 = vpop.f32.mrb[5].mxu1  ;;  %v1034_v57 = vsel %vm1030_vm3, %v874_v54, -inf }
 0x2c8   : > { %1038 = vmax.xlane.f32.xlu0 %v1037_v56  ;;  %1035 = vmax.xlane.f32.xlu1 %v1034_v57 }
 0x2ca   : > { %v1026_v58 = vpop.f32.mrb[6].mxu1 }
 0x2cb   : > { %v1759_v59 = vpop.f32.mrb[7].mxu1  ;;  %v1040_v60 = vsel %vm1030_vm3, %v1026_v58, -inf }
 0x2cc   : > { %1041 = vmax.xlane.f32.xlu0 %v1040_v60 }
 0x2d9   : > { %580 = vrot.lane.b32.xlu1 %v2071_v15, %s1952_s6  ;;  %s1890_s6 = sshll.u32 %s1962_s19, 4  ;;  %s1891_s6 = int_to_ptr.vmem [resolvable:$false] %s1890_s6 }
 0x2da   : > { %s1892_s7 = scalar_lea.vmem %s1891_s6, 256  ;;  %p1893_p0 = scmp.lt.s32.totalorder %s2245_s23, %s1891_s6 }
 0x351   : > { %v1033_v61 = vpop.xlane.xlu0 %1032 }
 0x352   : > { %v1043_v62 = vsub.f32 %v798_v49, %v1033_v61 }
 0x354   : > { %v1047_v63 = vmul.f32 1.442695, %v1043_v62 }
 0x355   : > { %v1039_v0 = vpop.xlane.xlu0 %1038  ;;  %v1036_v1 = vpop.xlane.xlu1 %1035 }
 0x356   : > { %1870 = vpow2.f32 %v1047_v63  ;;  %v1045_v2 = vsub.f32 %v950_v50, %v1039_v0  ;;  %v1044_v3 = vsub.f32 %v874_v54, %v1036_v1 }
 0x358   : > { %v1051_v4 = vmul.f32 1.442695, %v1045_v2  ;;  %v1049_v5 = vmul.f32 1.442695, %v1044_v3 }
 0x359   : > { %v1042_v6 = vpop.xlane.xlu0 %1041  ;;  %v581_v19 = vpop.permute.xlu1 %580 }
 0x35a   : > { %1872 = vpow2.f32 %v1051_v4  ;;  %v1046_v8 = vsub.f32 %v1026_v58, %v1042_v6 }
 0x35b   : > { %1874 = vpow2.f32 %v1049_v5 }
 0x35c   : > { %v1053_v9 = vmul.f32 1.442695, %v1046_v8  ;;  %v1519_v8 = vld [vmem:[%s2288_s2] sm:$0xff] }
 0x35e   : > { %1876 = vpow2.f32 %v1053_v9  ;;  %v1520_v9 = vld [vmem:[%s2288_s2 + $0x8] sm:$0xff] }
 0x360   : > { %v2143_v10 = vpop.eup %1870 }
 0x361   : > { %v1055_v11 = vsel %vm1030_vm3, %v2143_v10, 0.0 }
 0x362   : > { %1056 = vadd.xlane.f32.xlu1 %v1055_v11  ;;  %v1958_v11 = vmov 0.0|0.0  }
 0x364   : > { %v2147_v12 = vpop.eup %1872 }
 0x365   : > { %v1875_v13 = vpop.eup %1874  ;;  %v1061_v14 = vsel %vm1030_vm3, %v2147_v12, 0.0 }
 0x366   : > { %1062 = vadd.xlane.f32.xlu1 %v1061_v14  ;;  %v1058_v16 = vsel %vm1030_vm3, %v1875_v13, 0.0  ;;  %v1523_v14 = vld [vmem:[%s2288_s2 + $0x20] sm:$0xff] }
 0x367   : > { %1059 = vadd.xlane.f32.xlu0 %v1058_v16  ;;  %v1524_v16 = vld [vmem:[%s2288_s2 + $0x28] sm:$0xff] }
 0x368   : > { %v2152_v17 = vpop.eup %1876 }
 0x369   : > { %v1064_v18 = vsel %vm1030_vm3, %v2152_v17, 0.0 }
 0x36b   : > { %1065 = vadd.xlane.f32.xlu0 %v1064_v18 }
 0x377   : > { %586 = vrot.lane.b32.xlu1 %v2071_v15, %s1951_s5  ;;  %s1886_s5 = scalar_lea.vmem %s2245_s23, 128 }
 0x378   : > { %p1887_p11 = scmp.ne.s32.totalorder %s2245_s23, %s1886_s5  ;;  %p1894_p1 = scmp.lt.s32.totalorder %s1892_s7, %s1886_s5 }
 0x37a   : > { %p1888_p12 = pnand %p1887_p11, %p2026_p5  ;;  %p1895_p2 = por %p1894_p1, %p1893_p0 }
 0x37c   : > { %p1889_p13 = pneg %p1888_p12 }
 0x37e   : > { %p1896_p3 = pnand %p1895_p2, %p1889_p13 }
 0x381   : > { %583 = vrot.lane.b32.xlu0 %v2071_v15, %s1954_s8  ;;  %s1959_s8 = smov 32  }
 0x3ef   : > { %v1057_v20 = vpop.xlane.xlu1 %1056 }
 0x3f0   : > { %1878 = vrcp.f32 %v1057_v20 }
 0x3f3   : > { %v1063_v21 = vpop.xlane.xlu1 %1062 }
 0x3f4   : > { %v1060_v22 = vpop.xlane.xlu0 %1059 }
 0x3f5   : > { %1880 = vrcp.f32 %v1060_v22 }
 0x3f6   : > { %1882 = vrcp.f32 %v1063_v21 }
 0x3f7   : > { %v587_v23 = vpop.permute.xlu1 %586 }
 0x3f8   : > { %v1066_v24 = vpop.xlane.xlu0 %1065  ;;  %v605_v25 = vcombine.low %v581_v19, %v587_v23  ;;  %v606_v26 = vcombine.high %v581_v19, %v587_v23 }
 0x3f9   : > { %1884 = vrcp.f32 %v1066_v24 }
 0x3fa   : > { %v613_v30 = vrot.slane %v605_v25, %v2081_v31  ;;  %v620_v32 = vrot.slane %v606_v26, %v2081_v31  ;;  %v1879_v51 = vpop.eup %1878 }
 0x3fb   : > { %v1068_v1 = vmul.f32 %v1879_v51, %v2143_v10  ;;  %v1521_v10 = vld [vmem:[%s2288_s2 + $0x10] sm:$0xff] }
 0x3fc   : > { %v584_v27 = vpop.permute.xlu0 %583 }
 0x3fd   : > { %v589_v28 = vcombine.low %v2071_v15, %v584_v27  ;;  %v590_v29 = vcombine.high %v2071_v15, %v584_v27 }
 0x3ff   : > { %v597_v33 = vrot.slane %v589_v28, %v2081_v31  ;;  %v604_v34 = vrot.slane %v590_v29, %v2081_v31  ;;  %v1881_v56 = vpop.eup %1880 }
 0x400   : > { %v1883_v59 = vpop.eup %1882  ;;  %v1070_v2 = vmul.f32 %v1881_v56, %v1875_v13  ;;  %v1522_v13 = vld [vmem:[%s2288_s2 + $0x18] sm:$0xff] }
 0x401   : > { %v621_v35 = vcombine.low %v597_v33, %v613_v30  ;;  %v622_v36 = vcombine.high %v597_v33, %v613_v30  ;;  %v637_v37 = vcombine.low %v604_v34, %v620_v32  ;;  %v638_v39 = vcombine.high %v604_v34, %v620_v32 }
 0x402   : > { %v1072_v5 = vmul.f32 %v1883_v59, %v2147_v12  ;;  %v1808_v12 = vpack.c.bf16 %v1520_v9, %v1519_v8 }
 0x403   : > { %v629_v40 = vrot.slane %v621_v35, %v2083_v38  ;;  %v636_v41 = vrot.slane %v622_v36, %v2083_v38  ;;  %v645_v15 = vrot.slane %v637_v37, %v2083_v38  ;;  %v652_v42 = vrot.slane %v638_v39, %v2083_v38  ;;  %v1885_v0 = vpop.eup %1884 }
 0x404   : > { %v1074_v6 = vmul.f32 %v1885_v0, %v2152_v17  ;;  %v1814_v17 = vpack.c.bf16 %v1524_v16, %v1523_v14 }
 0x405   : > { %v657_v43 = vcombine.low %v629_v40, %v636_v41  ;;  %v1693_v44 = vcombine.high %v629_v40, %v636_v41  ;;  %v673_v45 = vcombine.low %v645_v15, %v652_v42  ;;  %v1694_v46 = vcombine.high %v645_v15, %v652_v42  ;;  %v1525_v40 = vld [vmem:[%s2288_s2 + $0x30] sm:$0xff]  ;;  %v1526_v41 = vld [vmem:[%s2288_s2 + $0x38] sm:$0xff] }
 0x407   : > { %v664_v47 = vrot.slane %v657_v43, %v2081_v31  ;;  %v672_v48 = vrot.slane %v1693_v44, %v2081_v31  ;;  %v680_v49 = vrot.slane %v673_v45, %v2081_v31  ;;  %v688_v50 = vrot.slane %v1694_v46, %v2081_v31 }
 0x408   : > { %v1817_v45 = vpack.c.bf16 %v1526_v41, %v1525_v40 }
 0x409   : > { %v689_v52 = vcombine.low %v664_v47, %v672_v48  ;;  %v705_v53 = vcombine.low %v680_v49, %v688_v50  ;;  %v690_v54 = vcombine.high %v664_v47, %v672_v48  ;;  %v706_v55 = vcombine.high %v680_v49, %v688_v50 }
 0x40b   : > { %v697_v57 = vrot.slane %v689_v52, %v2083_v38  ;;  %v713_v58 = vrot.slane %v705_v53, %v2083_v38  ;;  %v704_v60 = vrot.slane %v690_v54, %v2083_v38  ;;  %v720_v61 = vrot.slane %v706_v55, %v2083_v38 }
 0x40d   : > { %v721_v62 = vcombine.low %v697_v57, %v713_v58  ;;  %v722_v63 = vcombine.high %v697_v57, %v713_v58  ;;  %v723_v3 = vcombine.low %v704_v60, %v720_v61  ;;  %v724_v4 = vcombine.high %v704_v60, %v720_v61 }
 0x40f   : > { %1761 = vmatpush3.msra.mxu0 %v721_v62  ;;  %1766 = vmatpush3.msra.mxu1 %v722_v63 }
 0x410   : > { %1763 = vmatmul.mubr.msk.f32.vlgmr.msra.gmra.mrb[2].mxu0 %vm1030_vm3, %v1068_v1  ;;  %1768 = vmatmul.mubr.msk.f32.vlgmr.msra.gmra.mrb[8].mxu1 %vm1030_vm3, %v1070_v2 }
 0x411   : > { %1770 = vmatprep.subr.mxu0 %v1950_v7  ;;  %1775 = vmatprep.subr.mxu1 %v1950_v7 }
 0x412   : > { %1771 = vmatpush3.msra.mxu0 %v723_v3  ;;  %1776 = vmatpush3.msra.mxu1 %v724_v4 }
 0x413   : > { %1772 = vmatprep.mubr.msk.f32.mxu0 %vm1955_vm1, %v1950_v7  ;;  %1777 = vmatprep.mubr.msk.f32.mxu1 %vm1955_vm1, %v1950_v7 }
 0x414   : > { %1773 = vmatmul.mubr.msk.f32.vlgmr.msra.gmra.mrb[4].mxu0 %vm1030_vm3, %v1072_v5  ;;  %1778 = vmatmul.mubr.msk.f32.vlgmr.msra.gmra.mrb[10].mxu1 %vm1030_vm3, %v1074_v6  ;;  %v1709_v6 = vld [vmem:[%s2289_s3] ss:$0 sm:$0xff] }
 0x415   : > { %1796 = vmatprep.mubr.msk.f32.mxu0 %vm1955_vm1, %v1950_v7  ;;  %1807 = vmatprep.subr.bf16.mxu0 %v1958_v11  ;;  %v1811_v7 = vpack.c.bf16 %v1522_v13, %v1521_v10 }
 0x416   : > { %1809 = vmatpush3.bf16.msra.mxu0 %v1808_v12 }
 0x417   : > { %1810 = vmatprep.subr.bf16.mxu0 %v1958_v11 }
 0x41a   : > { %1812 = vmatpush3.bf16.msra.mxu0 %v1811_v7 }
 0x41b   : > { %1813 = vmatprep.subr.bf16.mxu0 %v1958_v11 }
 0x41e   : > { %1815 = vmatpush3.bf16.msra.mxu0 %v1814_v17 }
 0x41f   : > { %1816 = vmatprep.subr.bf16.mxu0 %v1958_v11 }
 0x422   : > { %1818 = vmatpush3.bf16.msra.mxu0 %v1817_v45 }
 0x4e3   : > { %v1144_v18 = vpop.f32.mrb[2].mxu0  ;;  %v1217_v19 = vpop.f32.mrb[8].mxu1 }
 0x4e4   : > { %v1764_v20 = vpop.f32.mrb[3].mxu0  ;;  %v1769_v21 = vpop.f32.mrb[9].mxu1 }
 0x4e7   : > { %v1290_v22 = vpop.f32.mrb[4].mxu0  ;;  %v1363_v23 = vpop.f32.mrb[10].mxu1 }
 0x4e8   : > { %v1367_v24 = vcombine.low %v1144_v18, %v1290_v22  ;;  %v1368_v25 = vcombine.high %v1144_v18, %v1290_v22  ;;  %v1383_v26 = vcombine.low %v1217_v19, %v1363_v23  ;;  %v1384_v27 = vcombine.high %v1217_v19, %v1363_v23  ;;  %v1774_v28 = vpop.f32.mrb[5].mxu0  ;;  %v1779_v29 = vpop.f32.mrb[11].mxu1 }
 0x4ea   : > { %v1375_v30 = vrot.slane %v1367_v24, %v2081_v31  ;;  %v1382_v32 = vrot.slane %v1368_v25, %v2081_v31  ;;  %v1391_v33 = vrot.slane %v1383_v26, %v2081_v31  ;;  %v1398_v34 = vrot.slane %v1384_v27, %v2081_v31 }
 0x4ec   : > { %v1399_v35 = vcombine.low %v1375_v30, %v1391_v33  ;;  %v1400_v36 = vcombine.high %v1375_v30, %v1391_v33  ;;  %v1415_v37 = vcombine.low %v1382_v32, %v1398_v34  ;;  %v1416_v39 = vcombine.high %v1382_v32, %v1398_v34 }
 0x4ee   : > { %v1407_v15 = vrot.slane %v1399_v35, %v2083_v38  ;;  %v1414_v42 = vrot.slane %v1400_v36, %v2083_v38  ;;  %v1423_v43 = vrot.slane %v1415_v37, %v2083_v38  ;;  %v1430_v44 = vrot.slane %v1416_v39, %v2083_v38 }
 0x4f0   : > { %v1435_v46 = vcombine.low %v1407_v15, %v1414_v42  ;;  %v1707_v47 = vcombine.high %v1407_v15, %v1414_v42  ;;  %v1451_v48 = vcombine.low %v1423_v43, %v1430_v44  ;;  %v1708_v49 = vcombine.high %v1423_v43, %v1430_v44 }
 0x4f2   : > { %v1442_v50 = vrot.slane %v1435_v46, %v2081_v31  ;;  %v1450_v51 = vrot.slane %v1707_v47, %v2081_v31  ;;  %v1458_v52 = vrot.slane %v1451_v48, %v2081_v31  ;;  %v1466_v53 = vrot.slane %v1708_v49, %v2081_v31 }
 0x4f4   : > { %v1468_v54 = vcombine.high %v1442_v50, %v1450_v51  ;;  %v1484_v55 = vcombine.high %v1458_v52, %v1466_v53  ;;  %v1467_v56 = vcombine.low %v1442_v50, %v1450_v51  ;;  %v1483_v57 = vcombine.low %v1458_v52, %v1466_v53 }
 0x4f6   : > { %v1482_v58 = vrot.slane %v1468_v54, %v2083_v38  ;;  %v1498_v59 = vrot.slane %v1484_v55, %v2083_v38  ;;  %v1475_v60 = vrot.slane %v1467_v56, %v2083_v38  ;;  %v1491_v61 = vrot.slane %v1483_v57, %v2083_v38 }
 0x4f8   : > { %v1501_v62 = vcombine.low %v1482_v58, %v1498_v59  ;;  %v1500_v63 = vcombine.high %v1475_v60, %v1491_v61  ;;  %v1502_v0 = vcombine.high %v1482_v58, %v1498_v59  ;;  %v1499_v1 = vcombine.low %v1475_v60, %v1491_v61 }
 0x4fa   : > { %1508 = vrot.lane.b32.xlu0 %v1501_v62, %s1959_s8  ;;  %1504 = vrot.lane.b32.xlu1 %v1500_v63, %s1960_s9 }
 0x4fe   : > { %1512 = vrot.lane.b32.xlu1 %v1502_v0, %s1961_s10 }
 0x56c   : > { %v1505_v31 = vpop.permute.xlu1 %1504  ;;  %v1509_v2 = vpop.permute.xlu0 %1508 }
 0x56d   : > { %v1515_v3 = vsel %vm725_vm2, %v1499_v1, %v1505_v31 }
 0x56e   : > { %v1516_v38 = vsel %vm202_vm0, %v1515_v3, %v1509_v2 }
 0x570   : > { %v1513_v4 = vpop.permute.xlu1 %1512 }
 0x571   : > { %v1518_v5 = vsel %vm1517_vm4, %v1516_v38, %v1513_v4 }
 0x572   : > { %1797 = vmatmul.mubr.msk.f32.vlgmr.msra.gmra.mrb[6].mxu0 %vm1534_vm5, %v1518_v5 }
 0x645   : > { %v1604_v8 = vpop.f32.mrb[6].mxu0 }
 0x646   : > { %v1605_v9 = vadd.f32 %v1709_v6, %v1604_v8  ;;  %v1798_v10 = vpop.f32.mrb[7].mxu0 }
 0x648   : > { %1608 = vst.msk [vmem:[%s188_s22] sm:$0xff] %vm202_vm0, %v1605_v9 }
 0x649   : > { %1899 = shalt.err (!%p1896_p3)
}
 0x64a   : > { %s1900_s8 = scalar_lea.hbm %s2243_s29, 128  ;;  %s1904_s11 = scalar_lea.hbm %s2290_s4, 256 }
 0x64b   : > { %p1901_p4 = scmp.ne.s32.totalorder %s2243_s29, %s1900_s8  ;;  %p1905_p9 = scmp.lt.u32.totalorder %s2243_s29, %s2290_s4 }
 0x64c   : > { %p1906_p10 = scmp.lt.u32.totalorder %s1904_s11, %s1900_s8  ;;  %p1908_p12 = scmp.lt.u32.totalorder %s1900_s8, %s2243_s29 }
 0x64d   : > { %p1902_p7 = pnand %p1901_p4, %p2026_p5 }
 0x64e   : > { %p1907_p11 = por %p1906_p10, %p1905_p9 }
 0x64f   : > { %p1903_p8 = pneg %p1902_p7 }
 0x650   : > { %p1909_p13 = por %p1908_p12, %p1907_p11 }
 0x652   : > { %p1910_p0 = pnand %p1909_p13, %p1903_p8 }
 0x654   : > { %1913 = shalt.err (!%p1910_p0)
}
 0x655   : > { %1819 = dma.vmem_to_hbm [thread:$0]  (%p2026_p5), %s2245_s23, 128, %s2243_s29, %s1610_s30  }
 0x656 PF: > { %p1825_p1 = scmp.ge.s32.totalorder %s1948_s18, 2  ;;  %s1635_s14 = sand.u32 1, %s1936_s15  }
 0x657   : > { %s1636_s20 = scalar_lea.sflag [#allocation3], %s1635_s14 }
 0x658   : > { %p1822_p2 = pnand %p1825_p1, %p2030_p6 }
 0x65a   : > { %1931 = dma.done.wait (!%p1822_p2), %s1636_s20, 128  }
 0x65b   : > { %1933 = vsyncadd (!%p1822_p2), %s1636_s20, 4294967168  ;;  %p14_p3 = scmp.ge.s32.totalorder %s2013_s21, 4   ;;  %s2293_s15 = smov %s1940_s16 }
 0x65c   : > { %s2294_s16 = smov %s1944_s17  ;;  %s2295_s17 = smov %s2024_s24 }
 0x65d   : > { %s2296_s18 = smov %s2013_s21  ;;  %16 = sbr.rel (!%p14_p3) target bundleno = 3 (0x3), region = 71 }
 0x664   :  { %1641 = vsyncpa [#allocation3], 1 }
 0x665   :  { %1643 = vsyncpa [#allocation3 + $0x1], 1 }

</bundles_post_ra>
